<compile_context>
chip_gen: v6e
topology: v6e:2x2x1
jax: 0.10.0
libtpu: 0.0.40
codegen_flags: <defaults>
</compile_context>

<pallas_src>
import functools
import math

import numpy as np
import jax
import jax.numpy as jnp
from jax.experimental import pallas as pl
from jax.experimental.pallas import tpu as pltpu

P_SCALE = (2, 4, 6, 8)
NUM_SCALES = len(P_SCALE)
# Per-axis bound on the *quantized* coordinate (coords // ps < KEY_BASE).
KEY_BASE = 256


def _round_up(x, m):
    return ((x + m - 1) // m) * m


# -----------------------------------------------------------------------------
# Phase 1: feature_reduce + ReLU, lane-dense, with the count ("ones") column.
# Emits bf16 reduced (query-side layout) and its bf16 transpose (key-side layout).
# -----------------------------------------------------------------------------
def _reduce_kernel(x_ref, w_ref, b_ref, o_ref, ot_ref):
    r = jnp.maximum(
        jnp.dot(x_ref[...], w_ref[...], preferred_element_type=jnp.float32)
        + b_ref[...], 0.0)
    o_ref[...] = r.astype(jnp.bfloat16)           # [TQ, CP]
    ot_ref[...] = r.T.astype(jnp.bfloat16)        # [CP, TQ] (transposed, key side)


# -----------------------------------------------------------------------------
# Phase 2: tiled voxel-mean pooling (transposed, scale-fused) + scale attention +
# output head.  Grid = (query tiles [parallel], key tiles [arbitrary reduction]).
# -----------------------------------------------------------------------------
def _sgfe_pool_kernel(cnt_col, tq,
                      kq_ref, kk_ref, redq_ref, redkT_ref,
                      w_fcl_ref, b_fcl_ref, w_fc_ref,
                      w_fcs_ref, b_fcs_ref, w_outfc_ref,
                      w_lin0a_ref, w_lin0b_ref, w_lin1_ref, b_lin1_ref,
                      o_ref, acc_ref):
    ki = pl.program_id(1)
    nk = pl.num_programs(1)

    @pl.when(ki == 0)
    def _():
        acc_ref[...] = jnp.zeros_like(acc_ref)

    kq = kq_ref[...]            # [S, TQ]  int32 query-tile keys (scale-major)
    kk = kk_ref[...]            # [TK, S]  int32 key-tile keys (point-major)
    redkT = redkT_ref[...]      # [CP, TK] bf16 = [reduced | 1 | 0-pad]^T

    # Fused, transposed pooling matmul: all 4 scales concatenated along the output
    # lane axis so the MXU sees a single [CP, TK] @ [TK, 4*TQ] with a >=256-wide N dim.
    eqT = jnp.concatenate(
        [(kk[:, j:j + 1] == kq[j:j + 1, :]).astype(jnp.bfloat16)
         for j in range(NUM_SCALES)], axis=1)                        # [TK, S*TQ]
    acc_ref[...] += jnp.dot(redkT, eqT, preferred_element_type=jnp.float32)

    @pl.when(ki == nk - 1)
    def _():
        relu = lambda a: jnp.maximum(a, 0.0)
        bf = lambda a: a.astype(jnp.bfloat16)

        scale_feats = []
        for j in range(NUM_SCALES):
            # [CP, TQ] -> [TQ, CP]; one XLU transpose per scale, per query tile only.
            acc_j = jnp.transpose(acc_ref[:, j * tq:(j + 1) * tq])   # [TQ, CP]
            cnt = acc_j[:, cnt_col:cnt_col + 1]                      # [TQ, 1] exact count
            # scatter_mean over voxels + gather back (count folded into the matmul)
            pooled = acc_j * pl.reciprocal(cnt, approx=True)         # [TQ, CP]
            # fc_list[j]: Linear + ReLU (padded weight rows >= cred are zero)
            att = relu(jnp.dot(bf(pooled), w_fcl_ref[j],
                               preferred_element_type=jnp.float32)
                       + b_fcl_ref[j:j + 1, :])                      # [TQ, HP]
            scale_feats.append(att)

        feat_s = scale_feats[0] + scale_feats[1] + scale_feats[2] + scale_feats[3]
        # self.fc: Linear(no bias) + ReLU
        feat_z = bf(relu(jnp.dot(bf(feat_s), w_fc_ref[...],
                                 preferred_element_type=jnp.float32)))

        # scale attention + weighted sum
        summed = jnp.zeros_like(feat_s)
        for j in range(NUM_SCALES):
            att_v = jax.nn.sigmoid(
                jnp.dot(feat_z, w_fcs_ref[j], preferred_element_type=jnp.float32)
                + b_fcs_ref[j:j + 1, :])
            summed = summed + scale_feats[j] * att_v

        # self.out_fc (no bias)
        scale_out = jnp.dot(bf(summed), w_outfc_ref[...],
                            preferred_element_type=jnp.float32)      # [TQ, CP]

        # linear_output on concat([reduced, scale_out]) via split weight halves.
        h = relu(jnp.dot(redq_ref[...], w_lin0a_ref[...],
                         preferred_element_type=jnp.float32)
                 + jnp.dot(bf(scale_out), w_lin0b_ref[...],
                           preferred_element_type=jnp.float32))
        o_ref[...] = (jnp.dot(bf(h), w_lin1_ref[...],
                              preferred_element_type=jnp.float32)
                      + b_lin1_ref[...])


# -----------------------------------------------------------------------------
# Glue: per-scale integer voxel keys (replaces torch.unique inverse indices).
# -----------------------------------------------------------------------------
def _check_key_range(coords):
    try:
        c = np.asarray(coords)
    except jax.errors.TracerArrayConversionError:
        return  # traced inside jit: skip the host-side guard
    assert c.min() >= 0, "SGFE: coords must be non-negative"
    assert c[:, 0].max() < (2 ** 31) // (KEY_BASE ** 3), \
        "SGFE: batch index too large for packed int32 voxel key"
    assert (c[:, 1:].max() // min(P_SCALE)) < KEY_BASE, \
        "SGFE: quantized coordinate exceeds KEY_BASE; packed key would collide"


def make_scale_keys(coords, n_pad):
    _check_key_range(coords)
    n = coords.shape[0]
    rows = []
    for ps in P_SCALE:
        q = jnp.concatenate([coords[:, :1], coords[:, 1:] // ps], axis=1)  # [N, 4]
        key = ((q[:, 0] * KEY_BASE + q[:, 1]) * KEY_BASE + q[:, 2]) * KEY_BASE + q[:, 3]
        rows.append(key.astype(jnp.int32))
    keys = jnp.stack(rows, axis=0)                               # [S, N]
    # Padded points get a sentinel key (-1): they only ever pool with each other and
    # their output rows are discarded, so real points are never contaminated.
    pad = jnp.full((NUM_SCALES, n_pad - n), -1, jnp.int32)
    return jnp.concatenate([keys, pad], axis=1)                  # [S, Np]


def _pad2(a, r, c):
    out = jnp.zeros((r, c), jnp.float32)
    return out.at[:a.shape[0], :a.shape[1]].set(a)


def _pad3(a, r, c):
    out = jnp.zeros((a.shape[0], r, c), jnp.float32)
    return out.at[:, :a.shape[1], :a.shape[2]].set(a)


def sgfe_forward(coords, x, params, *, tq=256, tk=1024):
    # tq, tk must be multiples of 128; tk is clamped below to divide the padded N.
    n, cin = x.shape
    cred = params["w_red"].shape[1]
    hdim = params["w_fcl"].shape[2]
    cout = params["w_lin1"].shape[1]

    cp = _round_up(cred + 1, 128)     # reduced channels + count column, lane padded
    hp = _round_up(hdim, 128)
    cop = _round_up(cout, 128)
    cnt_col = cred

    # Pad the point axis only to the query tile; shrink tk so it divides n_pad.
    n_pad = _round_up(n, tq)
    tk = math.gcd(min(tk, n_pad), n_pad)

    bf16 = jnp.bfloat16
    # ---- zero-padded (lane-dense) parameters; padded lanes stay exactly zero ----
    w_red = _pad2(params["w_red"], cin, cp)
    b_red = _pad2(params["b_red"], 1, cp).at[0, cnt_col].set(1.0)   # ones column
    w_fcl = _pad3(params["w_fcl"], cp, hp).astype(bf16)
    b_fcl = _pad2(params["b_fcl"], NUM_SCALES, hp)
    w_fc = _pad2(params["w_fc"], hp, hp).astype(bf16)
    w_fcs = _pad3(params["w_fcs"], hp, hp).astype(bf16)
    b_fcs = _pad2(params["b_fcs"], NUM_SCALES, hp)
    w_outfc = _pad2(params["w_outfc"], hp, cp).astype(bf16)
    w_lin0a = _pad2(params["w_lin0a"], cp, cp).astype(bf16)
    w_lin0b = _pad2(params["w_lin0b"], cp, cp).astype(bf16)
    w_lin1 = _pad2(params["w_lin1"], cp, cop).astype(bf16)
    b_lin1 = _pad2(params["b_lin1"], 1, cop)

    x_pad = jnp.zeros((n_pad, cin), jnp.float32).at[:n].set(x)
    keys_sn = make_scale_keys(coords, n_pad)          # [S, Np] query-side layout
    keys_ns = keys_sn.T                               # [Np, S] key-side layout

    # ---- phase 1: reduced features (bf16) + their transpose, once per point ----
    red_bf16, redT_bf16 = pl.pallas_call(
        _reduce_kernel,
        grid=(n_pad // tq,),
        in_specs=[pl.BlockSpec((tq, cin), lambda i: (i, 0)),
                  pl.BlockSpec((cin, cp), lambda i: (0, 0)),
                  pl.BlockSpec((1, cp), lambda i: (0, 0))],
        out_specs=(pl.BlockSpec((tq, cp), lambda i: (i, 0)),
                   pl.BlockSpec((cp, tq), lambda i: (0, i))),
        out_shape=(jax.ShapeDtypeStruct((n_pad, cp), bf16),
                   jax.ShapeDtypeStruct((cp, n_pad), bf16)),
        compiler_params=pltpu.CompilerParams(
            dimension_semantics=("parallel",),
            vmem_limit_bytes=32 * 1024 * 1024),
    )(x_pad, w_red, b_red)

    # ---- phase 2: tiled pooling + attention + output head ----
    qmap = lambda qi, ki: (qi, 0)
    const2 = lambda qi, ki: (0, 0)
    const3 = lambda qi, ki: (0, 0, 0)

    out = pl.pallas_call(
        functools.partial(_sgfe_pool_kernel, cnt_col, tq),
        grid=(n_pad // tq, n_pad // tk),
        in_specs=[
            pl.BlockSpec((NUM_SCALES, tq), lambda qi, ki: (0, qi)),  # query keys [S,TQ]
            pl.BlockSpec((tk, NUM_SCALES), lambda qi, ki: (ki, 0)),  # key keys  [TK,S]
            pl.BlockSpec((tq, cp), qmap),                            # reduced (query, bf16)
            pl.BlockSpec((cp, tk), lambda qi, ki: (0, ki)),          # reduced^T (key, bf16)
            pl.BlockSpec((NUM_SCALES, cp, hp), const3),              # w_fcl
            pl.BlockSpec((NUM_SCALES, hp), const2),                  # b_fcl
            pl.BlockSpec((hp, hp), const2),                          # w_fc
            pl.BlockSpec((NUM_SCALES, hp, hp), const3),              # w_fcs
            pl.BlockSpec((NUM_SCALES, hp), const2),                  # b_fcs
            pl.BlockSpec((hp, cp), const2),                          # w_outfc
            pl.BlockSpec((cp, cp), const2),                          # w_lin0a
            pl.BlockSpec((cp, cp), const2),                          # w_lin0b
            pl.BlockSpec((cp, cop), const2),                         # w_lin1
            pl.BlockSpec((1, cop), const2),                          # b_lin1
        ],
        out_specs=pl.BlockSpec((tq, cop), qmap),
        out_shape=jax.ShapeDtypeStruct((n_pad, cop), jnp.float32),
        scratch_shapes=[pltpu.VMEM((cp, NUM_SCALES * tq), jnp.float32)],
        compiler_params=pltpu.CompilerParams(
            dimension_semantics=("parallel", "arbitrary"),
            vmem_limit_bytes=32 * 1024 * 1024),
    )(keys_sn, keys_ns, red_bf16, redT_bf16,
      w_fcl, b_fcl, w_fc, w_fcs, b_fcs, w_outfc,
      w_lin0a, w_lin0b, w_lin1, b_lin1)

    return out[:n, :cout]


# -----------------------------------------------------------------------------
# Reference (numpy, f32) mirroring the PyTorch forward, using np.unique / scatter.
# -----------------------------------------------------------------------------
def sgfe_reference(coords, x, p):
    coords = np.asarray(coords)
    x = np.asarray(x, np.float32)
    relu = lambda a: np.maximum(a, 0.0)
    sigmoid = lambda a: 1.0 / (1.0 + np.exp(-a))
    reduced = relu(x @ np.asarray(p["w_red"]) + np.asarray(p["b_red"]))
    outputs = []
    for j, ps in enumerate(P_SCALE):
        idx = np.concatenate([coords[:, :1], coords[:, 1:] // ps], axis=1)
        _, inv = np.unique(idx, axis=0, return_inverse=True)
        m = int(inv.max()) + 1
        sums = np.zeros((m, reduced.shape[1]), np.float32)
        cnts = np.zeros((m, 1), np.float32)
        np.add.at(sums, inv, reduced)
        np.add.at(cnts, inv, 1.0)
        fkm = sums / cnts
        att = relu(fkm @ np.asarray(p["w_fcl"][j]) + np.asarray(p["b_fcl"][j]))[inv]
        outputs.append(att)
    sf = np.stack(outputs, axis=1)
    feat_s = sf.sum(1)
    feat_z = relu(feat_s @ np.asarray(p["w_fc"]))
    attv = sigmoid(np.stack(
        [feat_z @ np.asarray(p["w_fcs"][j]) + np.asarray(p["b_fcs"][j])
         for j in range(NUM_SCALES)], axis=1))
    scale = (sf * attv).sum(1) @ np.asarray(p["w_outfc"])
    h = relu(reduced @ np.asarray(p["w_lin0a"]) + scale @ np.asarray(p["w_lin0b"]))
    return h @ np.asarray(p["w_lin1"]) + np.asarray(p["b_lin1"])


def init_params(key, cin, cred, cout):
    h = cred // 2
    ks = jax.random.split(key, 13)
    nrm = lambda k, s: (jax.random.normal(k, s, jnp.float32) * 0.1)
    return {
        "w_red":   nrm(ks[0],  (cin, cred)),
        "b_red":   nrm(ks[1],  (1, cred)),
        "w_fcl":   nrm(ks[2],  (NUM_SCALES, cred, h)),
        "b_fcl":   nrm(ks[3],  (NUM_SCALES, h)),
        "w_fc":    nrm(ks[4],  (h, h)),
        "w_fcs":   nrm(ks[5],  (NUM_SCALES, h, h)),
        "b_fcs":   nrm(ks[6],  (NUM_SCALES, h)),
        "w_outfc": nrm(ks[7],  (h, cred)),
        "w_lin0a": nrm(ks[8],  (cred, cred)),   # first half of Linear(2*cred, cred)
        "w_lin0b": nrm(ks[9],  (cred, cred)),   # second half
        "w_lin1":  nrm(ks[10], (cred, cout)),
        "b_lin1":  nrm(ks[11], (1, cout)),
        # NOTE: self.scale_selection exists in __init__ but is unused in forward().
    }


if __name__ == "__main__":
    N, CIN, CRED, COUT = 500, 16, 32, 32   # N=500 -> padded to 512 (exercises padding)

    root = jax.random.PRNGKey(0)
    k_feat, k_b, k_xyz, k_par = jax.random.split(root, 4)

    x = jax.random.normal(k_feat, (N, CIN), jnp.float32)
    batch = jax.random.randint(k_b, (N, 1), 0, 2, jnp.int32)
    xyz = jax.random.randint(k_xyz, (N, 3), 0, 16, jnp.int32)
    coords = jnp.concatenate([batch, xyz], axis=1)        # [N, 4] int32

    params = init_params(k_par, CIN, CRED, COUT)

    out = jax.block_until_ready(sgfe_forward(coords, x, params))

    ref = sgfe_reference(coords, x, params)
    # Tolerance reflects the bf16 MXU path (pooling + head) with f32 accumulation.
    if not np.allclose(np.asarray(out), ref, rtol=3e-2, atol=1e-2):
        err = np.max(np.abs(np.asarray(out) - ref))
        raise AssertionError(f"Pallas SGFE output does not match reference (max err {err})")

    print("KERNEL_OK")
</pallas_src>

<mosaic_0001>
module attributes {stable_mosaic.version = 11 : i64} {
  func.func @_reduce_kernel(%arg0: i32, %arg1: memref<256x16xf32, #tpu.memory_space<vmem>>, %arg2: memref<16x128xf32, #tpu.memory_space<vmem>>, %arg3: memref<1x128xf32, #tpu.memory_space<vmem>>, %arg4: memref<256x128xbf16, #tpu.memory_space<vmem>>, %arg5: memref<128x256xbf16, #tpu.memory_space<vmem>>) attributes {dimension_semantics = [#tpu.dimension_semantics<parallel>], iteration_bounds = array<i64: 2>, scalar_prefetch = 0 : i64, scratch_operands = 0 : i64, tpu.core_type = #tpu.core_type<tc>, window_params = [{transform_indices = @transform_0, window_bounds = array<i64: 256, 16>}, {pipeline_mode = #tpu.pipeline_mode<synchronous>, transform_indices = @transform_1, window_bounds = array<i64: 16, 128>}, {pipeline_mode = #tpu.pipeline_mode<synchronous>, transform_indices = @transform_2, window_bounds = array<i64: 1, 128>}, {transform_indices = @transform_3, window_bounds = array<i64: 256, 128>}, {transform_indices = @transform_4, window_bounds = array<i64: 128, 256>}]} {
    %c0 = arith.constant 0 : index
    %c0_0 = arith.constant 0 : index
    %0 = vector.load %arg1[%c0, %c0_0] : memref<256x16xf32, #tpu.memory_space<vmem>>, vector<256x16xf32>
    %c0_1 = arith.constant 0 : index
    %c0_2 = arith.constant 0 : index
    %1 = vector.load %arg2[%c0_1, %c0_2] : memref<16x128xf32, #tpu.memory_space<vmem>>, vector<16x128xf32>
    %cst = arith.constant dense<0.000000e+00> : vector<256x128xf32>
    %2 = tpu.matmul %0, %1, %cst {dimension_numbers = #tpu.dot_dimension_numbers<[1], [0], [0], [1], [0, 0, 1, 1], [], []>} : vector<256x16xf32>, vector<16x128xf32>, vector<256x128xf32> -> vector<256x128xf32>
    %c0_3 = arith.constant 0 : index
    %c0_4 = arith.constant 0 : index
    %3 = vector.load %arg3[%c0_3, %c0_4] : memref<1x128xf32, #tpu.memory_space<vmem>>, vector<1x128xf32>
    %4 = vector.broadcast %3 : vector<1x128xf32> to vector<256x128xf32>
    %5 = arith.addf %2, %4 : vector<256x128xf32>
    %cst_5 = arith.constant 0.000000e+00 : f32
    %6 = vector.broadcast %cst_5 : f32 to vector<256x128xf32>
    %7 = arith.maximumf %5, %6 : vector<256x128xf32>
    %8 = arith.truncf %7 : vector<256x128xf32> to vector<256x128xbf16>
    %c0_6 = arith.constant 0 : index
    %c0_7 = arith.constant 0 : index
    %9 = vector.load %arg4[%c0_6, %c0_7] : memref<256x128xbf16, #tpu.memory_space<vmem>>, vector<256x128xbf16>
    tpu.vector_store %arg4[%c0_6, %c0_7], %8 {strides = array<i32>} : memref<256x128xbf16, #tpu.memory_space<vmem>>, vector<256x128xbf16>,
    %10 = tpu.transpose %7, [1, 0] : vector<256x128xf32> -> vector<128x256xf32>
    %11 = arith.truncf %10 : vector<128x256xf32> to vector<128x256xbf16>
    %c0_8 = arith.constant 0 : index
    %c0_9 = arith.constant 0 : index
    %12 = vector.load %arg5[%c0_8, %c0_9] : memref<128x256xbf16, #tpu.memory_space<vmem>>, vector<128x256xbf16>
    tpu.vector_store %arg5[%c0_8, %c0_9], %11 {strides = array<i32>} : memref<128x256xbf16, #tpu.memory_space<vmem>>, vector<128x256xbf16>,
    return
  }
  func.func @transform_0(%arg0: i32) -> (i32, i32) {
    %c0_i32 = arith.constant 0 : i32
    %c0_i32_0 = arith.constant 0 : i32
    return %arg0, %c0_i32 : i32, i32
  }
  func.func @transform_1(%arg0: i32) -> (i32, i32) {
    %c0_i32 = arith.constant 0 : i32
    %c0_i32_0 = arith.constant 0 : i32
    %c0_i32_1 = arith.constant 0 : i32
    return %c0_i32, %c0_i32_0 : i32, i32
  }
  func.func @transform_2(%arg0: i32) -> (i32, i32) {
    %c0_i32 = arith.constant 0 : i32
    %c0_i32_0 = arith.constant 0 : i32
    %c0_i32_1 = arith.constant 0 : i32
    return %c0_i32, %c0_i32_0 : i32, i32
  }
  func.func @transform_3(%arg0: i32) -> (i32, i32) {
    %c0_i32 = arith.constant 0 : i32
    %c0_i32_0 = arith.constant 0 : i32
    return %arg0, %c0_i32 : i32, i32
  }
  func.func @transform_4(%arg0: i32) -> (i32, i32) {
    %c0_i32 = arith.constant 0 : i32
    %c0_i32_0 = arith.constant 0 : i32
    return %c0_i32, %arg0 : i32, i32
  }
}

</mosaic_0001>

<bundles_post_ra>
// kernel: tpu_custom_call.1
= control target key start
LH: loop header
LB: loop body
LE: loop exit
PB: predicated region body
PF: predicated region fallthrough
CT: control target
= control target key end

     0   :  { %10 = vsyncpa [#allocation3], 0  ;;  %s2044_s0 = inlined_call_operand.vmem [shape: f32[512,16], index: 0, kind: input, shape index: {}]   ;;  %s2045_s1 = inlined_call_operand.vmem [shape: f32[16,128], index: 1, kind: input, shape index: {}]   ;;  %s2046_s2 = inlined_call_operand.vmem [shape: f32[1,128], index: 2, kind: input, shape index: {}]   ;;  %s2047_s3 = inlined_call_operand.hbm [shape: bf16[512,128], index: 3, kind: output, shape index: {0}]   ;;  %s2048_s4 = inlined_call_operand.hbm [shape: bf16[128,512], index: 4, kind: output, shape index: {1}]  }
   0x1   :  { %12 = vsyncpa [#allocation3 + $0x1], 0 }
   0x2   :  { %13 = vsyncpa [#allocation5], 0 }
   0x3   :  { %15 = vsyncpa [#allocation5 + $0x1], 0  ;;  %s1688_s15 = smov 0   ;;  %s1690_s16 = smov 0  }
   0x4   :  { %s1692_s17 = smov 0   ;;  %s1694_s18 = smov 0  }
   0x5 LB: > { %s1709_s19 = sadd.s32 4294967295, %s1654_s18   ;;  %s1071_s20 = sadd.s32 4294967294, %s1654_s18   ;;  %s1654_s18 = sphi %s1694_s18, %s2054_s18   ;;  %s1650_s17 = sphi %s1692_s17, %s2053_s17   ;;  %s1646_s16 = sphi %s1690_s16, %s2052_s16   ;;  %s1642_s15 = sphi %s1688_s15, %s2051_s15  }
   0x6   : > { %s1713_s21 = sadd.s32 1, %s1654_s18   ;;  %s96_s22 = sadd.s32 1, %s1650_s17 }
   0x7   : > { %s93_s23 = ssub.s32 %s1654_s18, %s1713_s21  ;;  %p106_p0 = scmp.ne.s32.totalorder %s1650_s17, %s1646_s16 }
   0x8   : > { %p94_p1 = scmp.eq.s32.totalorder %s93_s23, 0  ;;  %p107_p2 = scmp.eq.s32.totalorder %s1709_s19, 1 }
   0x9   : > { %p112_p3 = scmp.ne.s32.totalorder %s1646_s16, %s1642_s15  ;;  %p113_p4 = scmp.eq.s32.totalorder %s1071_s20, 1 }
   0xa   : > { %s1724_s24 = scalar_select %p94_p1, %s1650_s17, %s96_s22  }
   0xb   : > { %p1726_p5 = por %p107_p2, %p106_p0  ;;  %p1730_p6 = por %p113_p4, %p112_p3 }
   0xc   : > { %p1074_p7 = scmp.ge.s32.totalorder %s1654_s18, 1  ;;  %p172_p8 = scmp.lt.s32.totalorder %s1654_s18, 3 }
   0xe   : > { %p173_p9 = pnand %p1074_p7, %p172_p8 }
   0xf   : > { %s1077_s5 = sshll.u32 (!%p173_p9), %s1709_s19, 5  ;;  %s1818_s12 = sand.u32 (!%p173_p9), 1, %s1646_s16  }
  0x10   : > { %176 = sbr.rel (%p173_p9) target bundleno = 433 (0x1b1), region = 32  ;;  %p204_p10 = scmp.lt.s32.totalorder (!%p173_p9), %s1077_s5, 63 }
  0x11   : > { %s1075_s13 = sshll.u32 (!%p173_p9), %s1818_s12, 7  ;;  %s1216_s20 = sshll.u32 (!%p173_p9), %s1709_s19, 11 }
  0x12   : > { %s1837_s14 = scalar_lea.vmem (!%p173_p9), [#allocation2], %s1075_s13  ;;  %s1948_s28 = scalar_lea.hbm (!%p173_p9), %s2047_s3, %s1216_s20 }
  0x13   : > { %s961_s22 = sshll.u32 (!%p173_p9), %s1837_s14, 4  ;;  %s943_s29 = scalar_lea.sflag (!%p173_p9), [#allocation3], %s1818_s12  ;;  %s1950_s22 = int_to_ptr.vmem [resolvable:$true] %s961_s22 }
  0x14   : > { %s1564_s30 = scalar_lea.vmem (!%p173_p9), %s1950_s22, 2048 }
  0x15   : > { %v244_v0 = vld [vmem:[%s2045_s1 + $0x8] sm:$0xff]  ;;  %v243_v1 = vld [vmem:[%s2045_s1] sm:$0xff]  ;;  %s2056_s5 = smov (!%p204_p10, %s1077_s5), 63  ;;  %vm252_vm0 = vcmask 130048   ;;  %p1565_p11 = scmp.ne.s32.totalorder %s1950_s22, %s1564_s30 }
  0x16   : > { %1347 = vmatprep.subr.mxu0 %v244_v0  ;;  %1399 = vmatprep.subr.mxu1 %v244_v0  ;;  %s1078_s6 = sshll.u32 %s2056_s5, 3  ;;  %v1815_v34 = vld [vmem:[%s2046_s2] ss:$0 sm:$0xff]  ;;  %s1656_s5 = smov [#allocation2]  }
  0x17   : > { %1348 = vmatpush3.msra.mxu0 %v244_v0  ;;  %1401 = vmatpush3.msra.mxu1 %v244_v0  ;;  %s1746_s9 = scalar_lea.vmem %s2044_s0, %s1078_s6  ;;  %p1566_p12 = pnand %p1565_p11, %p1726_p5 }
  0x18   : > { %1349 = vmatprep.subr.mxu0 %v243_v1  ;;  %1400 = vmatprep.subr.mxu1 %v243_v1  ;;  %v211_v2 = vld [vmem:[%s1746_s9] sm:$0xff]  ;;  %v212_v4 = vld [vmem:[%s1746_s9 + $0x8] sm:$0xff]  ;;  %v213_v6 = vld [vmem:[%s1746_s9 + $0x10] sm:$0xff]  ;;  %s1568_s6 = sshll.u32 %s1656_s5, 4  ;;  %s1569_s6 = int_to_ptr.vmem [resolvable:$false] %s1568_s6 }
  0x19   : > { %1350 = vmatpush3.msra.mxu0 %v243_v1  ;;  %1402 = vmatpush3.msra.mxu1 %v243_v1  ;;  %v227_v3 = vld [vmem:[%s1746_s9 + $0x80] sm:$0xff]  ;;  %v228_v5 = vld [vmem:[%s1746_s9 + $0x88] sm:$0xff]  ;;  %v229_v7 = vld [vmem:[%s1746_s9 + $0x90] sm:$0xff]  ;;  %p1567_p13 = pneg %p1566_p12  ;;  %s1570_s7 = scalar_lea.vmem %s1569_s6, 4096 }
  0x1a   : > { %1351 = vmatprep.mubr.msk.f32.mxu0 %vm252_vm0, %v211_v2  ;;  %1375 = vmatprep.mubr.msk.f32.mxu1 %vm252_vm0, %v227_v3  ;;  %v214_v8 = vld [vmem:[%s1746_s9 + $0x18] sm:$0xff]  ;;  %v215_v10 = vld [vmem:[%s1746_s9 + $0x20] sm:$0xff]  ;;  %v216_v12 = vld [vmem:[%s1746_s9 + $0x28] sm:$0xff]  ;;  %p1571_p0 = scmp.lt.s32.totalorder %s1950_s22, %s1569_s6  ;;  %p1572_p1 = scmp.lt.s32.totalorder %s1570_s7, %s1564_s30 }
  0x1b   : > { %1352 = vmatmul.mubr.msk.f32.vlgmr.msra.gmra.mxu0 %vm252_vm0, %v212_v4  ;;  %1376 = vmatmul.mubr.msk.f32.vlgmr.msra.gmra.mxu1 %vm252_vm0, %v228_v5  ;;  %v230_v9 = vld [vmem:[%s1746_s9 + $0x98] sm:$0xff]  ;;  %v231_v11 = vld [vmem:[%s1746_s9 + $0xa0] sm:$0xff]  ;;  %v232_v13 = vld [vmem:[%s1746_s9 + $0xa8] sm:$0xff] }
  0x1c   : > { %1354 = vmatprep.mubr.msk.f32.mxu0 %vm252_vm0, %v213_v6  ;;  %1378 = vmatprep.mubr.msk.f32.mxu1 %vm252_vm0, %v229_v7  ;;  %v217_v14 = vld [vmem:[%s1746_s9 + $0x30] sm:$0xff]  ;;  %v218_v16 = vld [vmem:[%s1746_s9 + $0x38] sm:$0xff]  ;;  %v219_v18 = vld [vmem:[%s1746_s9 + $0x40] sm:$0xff]  ;;  %p1573_p2 = por %p1572_p1, %p1571_p0 }
  0x1d   : > { %v233_v15 = vld [vmem:[%s1746_s9 + $0xb0] sm:$0xff]  ;;  %v234_v17 = vld [vmem:[%s1746_s9 + $0xb8] sm:$0xff]  ;;  %v235_v19 = vld [vmem:[%s1746_s9 + $0xc0] sm:$0xff] }
  0x1e   : > { %v220_v20 = vld [vmem:[%s1746_s9 + $0x48] sm:$0xff]  ;;  %v221_v22 = vld [vmem:[%s1746_s9 + $0x50] sm:$0xff]  ;;  %v222_v24 = vld [vmem:[%s1746_s9 + $0x58] sm:$0xff]  ;;  %p1574_p3 = pnand %p1573_p2, %p1567_p13 }
  0x1f   : > { %1355 = vmatmul.mubr.msk.f32.gmra.mxu0 %vm252_vm0, %v214_v8  ;;  %1379 = vmatmul.mubr.msk.f32.gmra.mxu1 %vm252_vm0, %v230_v9  ;;  %v236_v21 = vld [vmem:[%s1746_s9 + $0xc8] sm:$0xff]  ;;  %v237_v23 = vld [vmem:[%s1746_s9 + $0xd0] sm:$0xff]  ;;  %v238_v25 = vld [vmem:[%s1746_s9 + $0xd8] sm:$0xff] }
  0x20   : > { %1357 = vmatprep.mubr.msk.f32.mxu0 %vm252_vm0, %v215_v10  ;;  %1381 = vmatprep.mubr.msk.f32.mxu1 %vm252_vm0, %v231_v11  ;;  %v223_v26 = vld [vmem:[%s1746_s9 + $0x60] sm:$0xff]  ;;  %v224_v28 = vld [vmem:[%s1746_s9 + $0x68] sm:$0xff]  ;;  %v225_v30 = vld [vmem:[%s1746_s9 + $0x70] sm:$0xff] }
  0x21   : > { %v239_v27 = vld [vmem:[%s1746_s9 + $0xe0] sm:$0xff]  ;;  %v240_v29 = vld [vmem:[%s1746_s9 + $0xe8] sm:$0xff]  ;;  %v241_v31 = vld [vmem:[%s1746_s9 + $0xf0] sm:$0xff] }
  0x22   : > { %v226_v32 = vld [vmem:[%s1746_s9 + $0x78] sm:$0xff] }
  0x23   : > { %1358 = vmatmul.mubr.msk.f32.gmra.mxu0 %vm252_vm0, %v216_v12  ;;  %1382 = vmatmul.mubr.msk.f32.gmra.mxu1 %vm252_vm0, %v232_v13  ;;  %v242_v33 = vld [vmem:[%s1746_s9 + $0xf8] sm:$0xff] }
  0x24   : > { %1360 = vmatprep.mubr.msk.f32.mxu0 %vm252_vm0, %v217_v14  ;;  %1384 = vmatprep.mubr.msk.f32.mxu1 %vm252_vm0, %v233_v15 }
  0x27   : > { %1361 = vmatmul.mubr.msk.f32.gmra.mxu0 %vm252_vm0, %v218_v16  ;;  %1385 = vmatmul.mubr.msk.f32.gmra.mxu1 %vm252_vm0, %v234_v17 }
  0x28   : > { %1363 = vmatprep.mubr.msk.f32.mxu0 %vm252_vm0, %v219_v18  ;;  %1387 = vmatprep.mubr.msk.f32.mxu1 %vm252_vm0, %v235_v19 }
  0x2b   : > { %1364 = vmatmul.mubr.msk.f32.gmra.mxu0 %vm252_vm0, %v220_v20  ;;  %1388 = vmatmul.mubr.msk.f32.gmra.mxu1 %vm252_vm0, %v236_v21 }
  0x2c   : > { %1366 = vmatprep.mubr.msk.f32.mxu0 %vm252_vm0, %v221_v22  ;;  %1390 = vmatprep.mubr.msk.f32.mxu1 %vm252_vm0, %v237_v23 }
  0x2f   : > { %1367 = vmatmul.mubr.msk.f32.gmra.mxu0 %vm252_vm0, %v222_v24  ;;  %1391 = vmatmul.mubr.msk.f32.gmra.mxu1 %vm252_vm0, %v238_v25 }
  0x30   : > { %1369 = vmatprep.mubr.msk.f32.mxu0 %vm252_vm0, %v223_v26  ;;  %1393 = vmatprep.mubr.msk.f32.mxu1 %vm252_vm0, %v239_v27 }
  0x33   : > { %1370 = vmatmul.mubr.msk.f32.gmra.mxu0 %vm252_vm0, %v224_v28  ;;  %1394 = vmatmul.mubr.msk.f32.gmra.mxu1 %vm252_vm0, %v240_v29 }
  0x34   : > { %1372 = vmatprep.mubr.msk.f32.mxu0 %vm252_vm0, %v225_v30  ;;  %1396 = vmatprep.mubr.msk.f32.mxu1 %vm252_vm0, %v241_v31 }
  0x37   : > { %1373 = vmatmul.mubr.msk.f32.gmra.mxu0 %vm252_vm0, %v226_v32  ;;  %1397 = vmatmul.mubr.msk.f32.gmra.mxu1 %vm252_vm0, %v242_v33 }
  0xdb   : > { %v1353_v35 = vpop.f32.mrf.mxu0  ;;  %v1377_v36 = vpop.f32.mrf.mxu1 }
  0xdc   : > { %v421_v37 = vadd.f32 %v1353_v35, %v1815_v34  ;;  %v501_v38 = vadd.f32 %v1377_v36, %v1815_v34 }
  0xdd   : > { %v415_v39 = vpop.f32.mrf.mxu0  ;;  %v495_v40 = vpop.f32.mrf.mxu1 }
  0xde   : > { %v416_v41 = vadd.f32 %v1815_v34, %v415_v39  ;;  %v496_v42 = vadd.f32 %v1815_v34, %v495_v40  ;;  %v575_v43 = vmax.f32 %v421_v37, 0.0  ;;  %v591_v44 = vmax.f32 %v501_v38, 0.0 }
  0xdf   : > { %v1356_v45 = vpop.f32.mrf.mxu0  ;;  %v1380_v46 = vpop.f32.mrf.mxu1 }
  0xe0   : > { %v574_v47 = vmax.f32 %v416_v41, 0.0  ;;  %v590_v48 = vmax.f32 %v496_v42, 0.0  ;;  %v1826_v49 = vadd.f32 %v1356_v45, %v1815_v34  ;;  %v1829_v50 = vadd.f32 %v1380_v46, %v1815_v34 }
  0xe1   : > { %v425_v51 = vpop.f32.mrf.mxu0  ;;  %v505_v52 = vpop.f32.mrf.mxu1  ;;  %v1454_v10 = vpack.i.bf16 %v591_v44, %v575_v43 }
  0xe2   : > { %v1221_v53 = vpack.c.bf16 %v575_v43, %v574_v47  ;;  %v1261_v54 = vpack.c.bf16 %v591_v44, %v590_v48  ;;  %v577_v55 = vmax.f32 %v1826_v49, 0.0  ;;  %v593_v56 = vmax.f32 %v1829_v50, 0.0 }
  0xe3   : > { %v426_v57 = vadd.f32 %v1815_v34, %v425_v51  ;;  %v506_v58 = vadd.f32 %v1815_v34, %v505_v52  ;;  %v1452_v59 = vpack.i.bf16 %v590_v48, %v574_v47  ;;  %v1359_v60 = vpop.f32.mrf.mxu0  ;;  %v1383_v61 = vpop.f32.mrf.mxu1 }
  0xe4   : > { %1222 = vst [vmem:[%s1837_s14] sm:$0xff] %v1221_v53   ;;  %1305 = vst [vmem:[%s1837_s14 + $0x40] sm:$0xff] %v1261_v54   ;;  %v1842_v62 = vadd.f32 %v1359_v60, %v1815_v34  ;;  %v1845_v63 = vadd.f32 %v1383_v61, %v1815_v34  ;;  %v1458_v39 = vpack.i.bf16 %v593_v56, %v577_v55 }
  0xe5   : > { %v576_v0 = vmax.f32 %v426_v57, 0.0  ;;  %v592_v1 = vmax.f32 %v506_v58, 0.0  ;;  %1453 = vxpose.xlu0.b32.start [1/16] %v1452_v59, 128  ;;  %v435_v2 = vpop.f32.mrf.mxu0  ;;  %v515_v3 = vpop.f32.mrf.mxu1 }
  0xe6   : > { %v579_v4 = vmax.f32 %v1842_v62, 0.0  ;;  %v595_v5 = vmax.f32 %v1845_v63, 0.0  ;;  %v436_v6 = vadd.f32 %v1815_v34, %v435_v2  ;;  %v516_v7 = vadd.f32 %v1815_v34, %v515_v3 }
  0xe7   : > { %v1226_v8 = vpack.c.bf16 %v577_v55, %v576_v0  ;;  %v1266_v9 = vpack.c.bf16 %v593_v56, %v592_v1  ;;  %v1362_v11 = vpop.f32.mrf.mxu0  ;;  %v1386_v12 = vpop.f32.mrf.mxu1  ;;  %v1456_v21 = vpack.i.bf16 %v592_v1, %v576_v0 }
  0xe8   : > { %v578_v13 = vmax.f32 %v436_v6, 0.0  ;;  %v594_v14 = vmax.f32 %v516_v7, 0.0  ;;  %v1852_v15 = vadd.f32 %v1362_v11, %v1815_v34  ;;  %v1855_v16 = vadd.f32 %v1386_v12, %v1815_v34 }
  0xe9   : > { %1298 = vst [vmem:[%s1837_s14 + $0x8] sm:$0xff] %v1226_v8   ;;  %1306 = vst [vmem:[%s1837_s14 + $0x48] sm:$0xff] %v1266_v9   ;;  %1455 = vxpose.xlu0.b32.cont [2/16] %v1454_v10, 128  ;;  %v445_v17 = vpop.f32.mrf.mxu0  ;;  %v525_v18 = vpop.f32.mrf.mxu1  ;;  %v1462_v9 = vpack.i.bf16 %v595_v5, %v579_v4 }
  0xea   : > { %v1231_v19 = vpack.c.bf16 %v579_v4, %v578_v13  ;;  %v1271_v20 = vpack.c.bf16 %v595_v5, %v594_v14  ;;  %v581_v22 = vmax.f32 %v1852_v15, 0.0  ;;  %v597_v23 = vmax.f32 %v1855_v16, 0.0 }
  0xeb   : > { %v1866_v24 = vadd.f32 %v1815_v34, %v445_v17  ;;  %v1869_v25 = vadd.f32 %v1815_v34, %v525_v18  ;;  %v1365_v26 = vpop.f32.mrf.mxu0  ;;  %v1389_v27 = vpop.f32.mrf.mxu1  ;;  %v1460_v50 = vpack.i.bf16 %v594_v14, %v578_v13 }
  0xec   : > { %1299 = vst [vmem:[%s1837_s14 + $0x10] sm:$0xff] %v1231_v19   ;;  %1307 = vst [vmem:[%s1837_s14 + $0x50] sm:$0xff] %v1271_v20   ;;  %v1874_v28 = vadd.f32 %v1365_v26, %v1815_v34  ;;  %v1877_v29 = vadd.f32 %v1389_v27, %v1815_v34 }
  0xed   : > { %1457 = vxpose.xlu0.b32.cont [3/16] %v1456_v21, 128  ;;  %v580_v30 = vmax.f32 %v1866_v24, 0.0  ;;  %v596_v31 = vmax.f32 %v1869_v25, 0.0  ;;  %v455_v32 = vpop.f32.mrf.mxu0  ;;  %v535_v33 = vpop.f32.mrf.mxu1 }
  0xee   : > { %v583_v35 = vmax.f32 %v1874_v28, 0.0  ;;  %v599_v36 = vmax.f32 %v1877_v29, 0.0  ;;  %v1884_v37 = vadd.f32 %v1815_v34, %v455_v32  ;;  %v1887_v38 = vadd.f32 %v1815_v34, %v535_v33 }
  0xef   : > { %v1236_v40 = vpack.c.bf16 %v581_v22, %v580_v30  ;;  %v1276_v41 = vpack.c.bf16 %v597_v23, %v596_v31  ;;  %v1368_v42 = vpop.f32.mrf.mxu0  ;;  %v1392_v43 = vpop.f32.mrf.mxu1  ;;  %v1464_v21 = vpack.i.bf16 %v596_v31, %v580_v30  ;;  %v1466_v30 = vpack.i.bf16 %v597_v23, %v581_v22 }
  0xf0   : > { %v582_v44 = vmax.f32 %v1884_v37, 0.0  ;;  %v598_v45 = vmax.f32 %v1887_v38, 0.0  ;;  %v1896_v46 = vadd.f32 %v1368_v42, %v1815_v34  ;;  %v1899_v47 = vadd.f32 %v1392_v43, %v1815_v34 }
  0xf1   : > { %1459 = vxpose.xlu0.b32.cont [4/16] %v1458_v39, 128  ;;  %1300 = vst [vmem:[%s1837_s14 + $0x18] sm:$0xff] %v1236_v40   ;;  %1308 = vst [vmem:[%s1837_s14 + $0x58] sm:$0xff] %v1276_v41   ;;  %v465_v48 = vpop.f32.mrf.mxu0  ;;  %v545_v49 = vpop.f32.mrf.mxu1 }
  0xf2   : > { %v1241_v51 = vpack.c.bf16 %v583_v35, %v582_v44  ;;  %v1281_v52 = vpack.c.bf16 %v599_v36, %v598_v45  ;;  %v585_v53 = vmax.f32 %v1896_v46, 0.0  ;;  %v601_v54 = vmax.f32 %v1899_v47, 0.0 }
  0xf3   : > { %v466_v55 = vadd.f32 %v1815_v34, %v465_v48  ;;  %v546_v56 = vadd.f32 %v1815_v34, %v545_v49  ;;  %v1371_v57 = vpop.f32.mrf.mxu0  ;;  %v1395_v58 = vpop.f32.mrf.mxu1  ;;  %v1468_v38 = vpack.i.bf16 %v598_v45, %v582_v44 }
  0xf4   : > { %1301 = vst [vmem:[%s1837_s14 + $0x20] sm:$0xff] %v1241_v51   ;;  %1309 = vst [vmem:[%s1837_s14 + $0x60] sm:$0xff] %v1281_v52   ;;  %v481_v59 = vadd.f32 %v1371_v57, %v1815_v34  ;;  %v561_v60 = vadd.f32 %v1395_v58, %v1815_v34  ;;  %v1474_v16 = vpack.i.bf16 %v601_v54, %v585_v53 }
  0xf5   : > { %1461 = vxpose.xlu0.b32.cont [5/16] %v1460_v50, 128  ;;  %v584_v61 = vmax.f32 %v466_v55, 0.0  ;;  %v600_v0 = vmax.f32 %v546_v56, 0.0  ;;  %v475_v1 = vpop.f32.mrf.mxu0  ;;  %v555_v2 = vpop.f32.mrf.mxu1 }
  0xf6   : > { %v587_v3 = vmax.f32 %v481_v59, 0.0  ;;  %v603_v6 = vmax.f32 %v561_v60, 0.0  ;;  %v476_v7 = vadd.f32 %v1815_v34, %v475_v1  ;;  %v556_v8 = vadd.f32 %v1815_v34, %v555_v2 }
  0xf7   : > { %v1246_v10 = vpack.c.bf16 %v585_v53, %v584_v61  ;;  %v1286_v11 = vpack.c.bf16 %v601_v54, %v600_v0  ;;  %v1374_v12 = vpop.f32.mrf.mxu0  ;;  %v1398_v13 = vpop.f32.mrf.mxu1  ;;  %v1472_v15 = vpack.i.bf16 %v600_v0, %v584_v61 }
  0xf8   : > { %v586_v14 = vmax.f32 %v476_v7, 0.0  ;;  %v602_v17 = vmax.f32 %v556_v8, 0.0  ;;  %v491_v18 = vadd.f32 %v1374_v12, %v1815_v34  ;;  %v571_v19 = vadd.f32 %v1398_v13, %v1815_v34 }
  0xf9   : > { %1463 = vxpose.xlu0.b32.cont [6/16] %v1462_v9, 128  ;;  %1302 = vst [vmem:[%s1837_s14 + $0x28] sm:$0xff] %v1246_v10   ;;  %1310 = vst [vmem:[%s1837_s14 + $0x68] sm:$0xff] %v1286_v11   ;;  %v485_v20 = vpop.f32.mrf.mxu0  ;;  %v565_v62 = vpop.f32.mrf.mxu1  ;;  %v1478_v23 = vpack.i.bf16 %v603_v6, %v587_v3 }
  0xfa   : > { %v1251_v63 = vpack.c.bf16 %v587_v3, %v586_v14  ;;  %v1291_v4 = vpack.c.bf16 %v603_v6, %v602_v17  ;;  %v589_v5 = vmax.f32 %v491_v18, 0.0  ;;  %v605_v24 = vmax.f32 %v571_v19, 0.0 }
  0xfb   : > { %v486_v25 = vadd.f32 %v1815_v34, %v485_v20  ;;  %v566_v26 = vadd.f32 %v1815_v34, %v565_v62  ;;  %v1470_v34 = vpack.i.bf16 %v599_v36, %v583_v35  ;;  %v1476_v22 = vpack.i.bf16 %v602_v17, %v586_v14 }
  0xfc   : > { %1303 = vst [vmem:[%s1837_s14 + $0x30] sm:$0xff] %v1251_v63   ;;  %1311 = vst [vmem:[%s1837_s14 + $0x70] sm:$0xff] %v1291_v4   ;;  %v1482_v39 = vpack.i.bf16 %v605_v24, %v589_v5 }
  0xfd   : > { %1465 = vxpose.xlu0.b32.cont [7/16] %v1464_v21, 128  ;;  %v588_v27 = vmax.f32 %v486_v25, 0.0  ;;  %v604_v32 = vmax.f32 %v566_v26, 0.0 }
  0xff   : > { %v1256_v31 = vpack.c.bf16 %v589_v5, %v588_v27  ;;  %v1296_v33 = vpack.c.bf16 %v605_v24, %v604_v32  ;;  %v1480_v37 = vpack.i.bf16 %v604_v32, %v588_v27 }
 0x101   : > { %1467 = vxpose.xlu0.b32.cont [8/16] %v1466_v30, 128  ;;  %1304 = vst [vmem:[%s1837_s14 + $0x38] sm:$0xff] %v1256_v31   ;;  %1312 = vst [vmem:[%s1837_s14 + $0x78] sm:$0xff] %v1296_v33  }
 0x105   : > { %1469 = vxpose.xlu0.b32.cont [9/16] %v1468_v38, 128 }
 0x109   : > { %1471 = vxpose.xlu0.b32.cont [10/16] %v1470_v34, 128 }
 0x10d   : > { %1473 = vxpose.xlu0.b32.cont [11/16] %v1472_v15, 128 }
 0x111   : > { %1475 = vxpose.xlu0.b32.cont [12/16] %v1474_v16, 128 }
 0x115   : > { %1477 = vxpose.xlu0.b32.cont [13/16] %v1476_v22, 128 }
 0x119   : > { %1479 = vxpose.xlu0.b32.cont [14/16] %v1478_v23, 128 }
 0x11d   : > { %1481 = vxpose.xlu0.b32.cont [15/16] %v1480_v37, 128 }
 0x121   : > { %1483 = vxpose.xlu0.b32.end [16/16] %v1482_v39, 128 }
 0x122   : > { %1577 = shalt.err (!%p1574_p3)
}
 0x123   : > { %s1578_s8 = scalar_lea.hbm %s1948_s28, 2048  ;;  %s1582_s11 = scalar_lea.hbm %s2047_s3, 4096 }
 0x124   : > { %p1579_p4 = scmp.ne.s32.totalorder %s1948_s28, %s1578_s8  ;;  %p1583_p9 = scmp.lt.s32.totalorder %s1948_s28, %s2047_s3 }
 0x125   : > { %p1584_p10 = scmp.lt.s32.totalorder %s1582_s11, %s1578_s8 }
 0x126   : > { %p1580_p7 = pnand %p1579_p4, %p1726_p5 }
 0x127   : > { %p1585_p11 = por %p1584_p10, %p1583_p9 }
 0x128   : > { %p1581_p8 = pneg %p1580_p7 }
 0x12a   : > { %p1586_p12 = pnand %p1585_p11, %p1581_p8 }
 0x12c   : > { %1589 = shalt.err (!%p1586_p12)
}
 0x12d   : > { %s1657_s23 = smov 64   ;;  %s1658_s27 = smov 4  }
 0x12e   : > { %1403 = dma.vmem_to_hbm [thread:$0]  (%p1726_p5), %s1950_s22, 2048, %s1948_s28, %s943_s29, %s1657_s23, %s1657_s23, %s1658_s27  }
 0x12f   : > { %s1977_s30 = scalar_lea.vmem [#allocation4], %s1075_s13  ;;  %s1217_s13 = sshll.u32 %s1709_s19, 7 }
 0x130   : > { %s977_s22 = sshll.u32 %s1977_s30, 4  ;;  %s1999_s5 = scalar_lea.hbm %s2048_s4, %s1217_s13  ;;  %s2001_s22 = int_to_ptr.vmem [resolvable:$true] %s977_s22 }
 0x131   : > { %s948_s6 = scalar_lea.sflag [#allocation5], %s1818_s12  ;;  %s1590_s19 = scalar_lea.vmem %s2001_s22, 2048 }
 0x132   : > { %p1591_p13 = scmp.ne.s32.totalorder %s2001_s22, %s1590_s19  ;;  %s1659_s7 = smov [#allocation4]  }
 0x133   : > { %s1594_s8 = sshll.u32 %s1659_s7, 4  ;;  %s1595_s8 = int_to_ptr.vmem [resolvable:$false] %s1594_s8 }
 0x134   : > { %p1592_p0 = pnand %p1591_p13, %p1726_p5  ;;  %s1596_s9 = scalar_lea.vmem %s1595_s8, 4096 }
 0x135   : > { %p1597_p2 = scmp.lt.s32.totalorder %s2001_s22, %s1595_s8  ;;  %p1598_p3 = scmp.lt.s32.totalorder %s1596_s9, %s1590_s19 }
 0x136   : > { %p1593_p1 = pneg %p1592_p0 }
 0x137   : > { %p1599_p4 = por %p1598_p3, %p1597_p2 }
 0x139   : > { %p1600_p7 = pnand %p1599_p4, %p1593_p1 }
 0x161   : > { %v1484_v28 = vpop.trf.xlu0 }
 0x162   : > { %v1488_v29 = vunpack.i.h.bf16 %v1484_v28  ;;  %v1485_v35 = vunpack.i.l.bf16 %v1484_v28 }
 0x164   : > { %v1200_v36 = vpack.c.bf16 %v1488_v29, %v1485_v35 }
 0x165   : > { %v1489_v40 = vpop.trf.xlu0 }
 0x166   : > { %926 = vst [vmem:[%s1977_s30] sm:$0xff] %v1200_v36  ;;  %v1493_v41 = vunpack.i.h.bf16 %v1489_v40  ;;  %v1490_v42 = vunpack.i.l.bf16 %v1489_v40 }
 0x168   : > { %v1201_v43 = vpack.c.bf16 %v1493_v41, %v1490_v42 }
 0x169   : > { %v1494_v44 = vpop.trf.xlu0 }
 0x16a   : > { %927 = vst [vmem:[%s1977_s30 + $0x8] sm:$0xff] %v1201_v43  ;;  %v1498_v45 = vunpack.i.h.bf16 %v1494_v44  ;;  %v1495_v46 = vunpack.i.l.bf16 %v1494_v44 }
 0x16c   : > { %v1202_v47 = vpack.c.bf16 %v1498_v45, %v1495_v46 }
 0x16d   : > { %v1499_v48 = vpop.trf.xlu0 }
 0x16e   : > { %928 = vst [vmem:[%s1977_s30 + $0x10] sm:$0xff] %v1202_v47  ;;  %v1503_v49 = vunpack.i.h.bf16 %v1499_v48  ;;  %v1500_v50 = vunpack.i.l.bf16 %v1499_v48 }
 0x170   : > { %v1203_v51 = vpack.c.bf16 %v1503_v49, %v1500_v50 }
 0x171   : > { %v1504_v52 = vpop.trf.xlu0 }
 0x172   : > { %929 = vst [vmem:[%s1977_s30 + $0x18] sm:$0xff] %v1203_v51  ;;  %v1508_v53 = vunpack.i.h.bf16 %v1504_v52  ;;  %v1505_v54 = vunpack.i.l.bf16 %v1504_v52 }
 0x174   : > { %v1204_v55 = vpack.c.bf16 %v1508_v53, %v1505_v54 }
 0x175   : > { %v1509_v56 = vpop.trf.xlu0 }
 0x176   : > { %930 = vst [vmem:[%s1977_s30 + $0x20] sm:$0xff] %v1204_v55  ;;  %v1513_v57 = vunpack.i.h.bf16 %v1509_v56  ;;  %v1510_v58 = vunpack.i.l.bf16 %v1509_v56 }
 0x178   : > { %v1205_v59 = vpack.c.bf16 %v1513_v57, %v1510_v58 }
 0x179   : > { %v1514_v60 = vpop.trf.xlu0 }
 0x17a   : > { %931 = vst [vmem:[%s1977_s30 + $0x28] sm:$0xff] %v1205_v59  ;;  %v1518_v61 = vunpack.i.h.bf16 %v1514_v60  ;;  %v1515_v0 = vunpack.i.l.bf16 %v1514_v60 }
 0x17c   : > { %v1206_v1 = vpack.c.bf16 %v1518_v61, %v1515_v0 }
 0x17d   : > { %v1519_v2 = vpop.trf.xlu0 }
 0x17e   : > { %932 = vst [vmem:[%s1977_s30 + $0x30] sm:$0xff] %v1206_v1  ;;  %v1523_v3 = vunpack.i.h.bf16 %v1519_v2  ;;  %v1520_v6 = vunpack.i.l.bf16 %v1519_v2 }
 0x180   : > { %v1207_v7 = vpack.c.bf16 %v1523_v3, %v1520_v6 }
 0x181   : > { %v1524_v8 = vpop.trf.xlu0 }
 0x182   : > { %933 = vst [vmem:[%s1977_s30 + $0x38] sm:$0xff] %v1207_v7  ;;  %v1528_v9 = vunpack.i.h.bf16 %v1524_v8  ;;  %v1525_v10 = vunpack.i.l.bf16 %v1524_v8 }
 0x184   : > { %v1208_v11 = vpack.c.bf16 %v1528_v9, %v1525_v10 }
 0x185   : > { %v1529_v12 = vpop.trf.xlu0 }
 0x186   : > { %934 = vst [vmem:[%s1977_s30 + $0x40] sm:$0xff] %v1208_v11  ;;  %v1533_v13 = vunpack.i.h.bf16 %v1529_v12  ;;  %v1530_v14 = vunpack.i.l.bf16 %v1529_v12 }
 0x188   : > { %v1209_v17 = vpack.c.bf16 %v1533_v13, %v1530_v14 }
 0x189   : > { %v1534_v18 = vpop.trf.xlu0 }
 0x18a   : > { %935 = vst [vmem:[%s1977_s30 + $0x48] sm:$0xff] %v1209_v17  ;;  %v1538_v19 = vunpack.i.h.bf16 %v1534_v18  ;;  %v1535_v20 = vunpack.i.l.bf16 %v1534_v18 }
 0x18c   : > { %v1210_v62 = vpack.c.bf16 %v1538_v19, %v1535_v20 }
 0x18d   : > { %v1539_v21 = vpop.trf.xlu0 }
 0x18e   : > { %936 = vst [vmem:[%s1977_s30 + $0x50] sm:$0xff] %v1210_v62  ;;  %v1543_v63 = vunpack.i.h.bf16 %v1539_v21  ;;  %v1540_v4 = vunpack.i.l.bf16 %v1539_v21 }
 0x190   : > { %v1211_v5 = vpack.c.bf16 %v1543_v63, %v1540_v4 }
 0x191   : > { %v1544_v24 = vpop.trf.xlu0 }
 0x192   : > { %937 = vst [vmem:[%s1977_s30 + $0x58] sm:$0xff] %v1211_v5  ;;  %v1548_v25 = vunpack.i.h.bf16 %v1544_v24  ;;  %v1545_v26 = vunpack.i.l.bf16 %v1544_v24 }
 0x194   : > { %v1212_v27 = vpack.c.bf16 %v1548_v25, %v1545_v26 }
 0x195   : > { %v1549_v32 = vpop.trf.xlu0 }
 0x196   : > { %938 = vst [vmem:[%s1977_s30 + $0x60] sm:$0xff] %v1212_v27  ;;  %v1553_v30 = vunpack.i.h.bf16 %v1549_v32  ;;  %v1550_v31 = vunpack.i.l.bf16 %v1549_v32 }
 0x198   : > { %v1213_v33 = vpack.c.bf16 %v1553_v30, %v1550_v31 }
 0x199   : > { %v1554_v38 = vpop.trf.xlu0 }
 0x19a   : > { %939 = vst [vmem:[%s1977_s30 + $0x68] sm:$0xff] %v1213_v33  ;;  %v1558_v34 = vunpack.i.h.bf16 %v1554_v38  ;;  %v1555_v15 = vunpack.i.l.bf16 %v1554_v38 }
 0x19c   : > { %v1214_v16 = vpack.c.bf16 %v1558_v34, %v1555_v15 }
 0x19d   : > { %v1559_v22 = vpop.trf.xlu0 }
 0x19e   : > { %940 = vst [vmem:[%s1977_s30 + $0x70] sm:$0xff] %v1214_v16  ;;  %v1563_v23 = vunpack.i.h.bf16 %v1559_v22  ;;  %v1560_v37 = vunpack.i.l.bf16 %v1559_v22 }
 0x1a0   : > { %v1215_v39 = vpack.c.bf16 %v1563_v23, %v1560_v37 }
 0x1a2   : > { %941 = vst [vmem:[%s1977_s30 + $0x78] sm:$0xff] %v1215_v39 }
 0x1a3   : > { %1603 = shalt.err (!%p1600_p7)
}
 0x1a4   : > { %s1604_s10 = scalar_lea.hbm %s1999_s5, 2048  ;;  %s1608_s20 = scalar_lea.hbm %s2048_s4, 4096 }
 0x1a5   : > { %p1605_p8 = scmp.ne.s32.totalorder %s1999_s5, %s1604_s10  ;;  %p1609_p11 = scmp.lt.s32.totalorder %s1999_s5, %s2048_s4 }
 0x1a6   : > { %p1610_p12 = scmp.lt.s32.totalorder %s1608_s20, %s1604_s10 }
 0x1a7   : > { %p1606_p9 = pnand %p1605_p8, %p1726_p5 }
 0x1a8   : > { %p1611_p13 = por %p1610_p12, %p1609_p11 }
 0x1a9   : > { %p1607_p10 = pneg %p1606_p9 }
 0x1ab   : > { %p1612_p0 = pnand %p1611_p13, %p1607_p10 }
 0x1ad   : > { %1615 = shalt.err (!%p1612_p0)
}
 0x1ae   : > { %s1660_s30 = smov 128   ;;  %s1661_s13 = smov 256  }
 0x1af   : > { %s1662_s28 = smov 8  }
 0x1b0   : > { %1404 = dma.vmem_to_hbm [thread:$0]  (%p1726_p5), %s2001_s22, 2048, %s1999_s5, %s948_s6, %s1660_s30, %s1661_s13, %s1662_s28  }
 0x1b1 PF: > { %p1414_p1 = scmp.ge.s32.totalorder %s1654_s18, 2  ;;  %s992_s29 = sand.u32 1, %s1642_s15  }
 0x1b2   : > { %s993_s19 = scalar_lea.sflag [#allocation3], %s992_s29 }
 0x1b3   : > { %p1408_p2 = pnand %p1414_p1, %p1730_p6 }
 0x1b5   : > { %p1409_p3 = pneg %p1408_p2 }
 0x1b7   : > { %1633 = dma.done.wait (%p1409_p3), %s993_s19, 2048  }
 0x1b8   : > { %1635 = vsyncadd (%p1409_p3), %s993_s19, 4294965248  ;;  %s1002_s7 = scalar_lea.sflag [#allocation5], %s992_s29 }
 0x1b9   : > { %1637 = dma.done.wait (%p1409_p3), %s1002_s7, 2048  }
 0x1ba   : > { %1639 = vsyncadd (%p1409_p3), %s1002_s7, 4294965248  ;;  %p18_p5 = scmp.ge.s32.totalorder %s1713_s21, 4   ;;  %s2051_s15 = smov %s1646_s16 }
 0x1bb   : > { %s2052_s16 = smov %s1650_s17  ;;  %s2053_s17 = smov %s1724_s24 }
 0x1bc   : > { %s2054_s18 = smov %s1713_s21  ;;  %20 = sbr.rel (!%p18_p5) target bundleno = 5 (0x5), region = 84 }
 0x1c1   :  { %1007 = vsyncpa [#allocation3], 1 }
 0x1c2   :  { %1009 = vsyncpa [#allocation3 + $0x1], 1 }
 0x1c3   :  { %1010 = vsyncpa [#allocation5], 1 }
 0x1c4   :  { %1012 = vsyncpa [#allocation5 + $0x1], 1 }

</bundles_post_ra>
